<compile_context>
chip_gen: v7x
topology: tpu7x:2x2x1
jax: 0.10.0
libtpu: 0.0.40
codegen_flags: <defaults>
</compile_context>

<pallas_src>
import functools

import jax
import jax.numpy as jnp
from jax.experimental import pallas as pl
from jax.experimental.pallas import tpu as pltpu


def _round_up(x, m):
    return ((x + m - 1) // m) * m


def _lane_fold_factor(B, C):
    """Smallest row-fold f with (C*f) % 128 == 0 and B % f == 0 (1 if none)."""
    if C % 128 == 0:
        return 1
    for f in range(2, 129):
        if (C * f) % 128 == 0 and B % f == 0:
            return f
    return 1


def _tpu_generation():
    """Return (vmem_limit_bytes, target_block_bytes, num_tensorcores)."""
    kind = ""
    try:
        kind = jax.devices()[0].device_kind.lower()
    except Exception:
        pass
    vmem_cap = None
    try:
        vmem_cap = int(pltpu.get_tpu_info().vmem_capacity_bytes)
    except Exception:
        pass
    is_v7 = ("v7" in kind) or ("7x" in kind)
    if vmem_cap is None:
        if ("v2" in kind) or ("v3" in kind):
            vmem_cap = 16 * 2**20
        elif is_v7:
            vmem_cap = 64 * 2**20
        else:
            vmem_cap = 128 * 2**20        # v4 / v5e / v6e
    # Leave ~25% headroom for compiler temporaries / internal scratch.
    vmem_limit = min(int(vmem_cap * 0.75), 64 * 2**20)
    # 2 inputs x 2 pipeline buffers must fit comfortably inside the limit.
    target_block_bytes = max(2**20, min(8 * 2**20, vmem_limit // 6))
    n_cores = 2 if is_v7 else 1
    return vmem_limit, target_block_bytes, n_cores


def _bce_mixup_kernel(x_ref, t_ref, pwm1_ref, out_ref, *, block_rows, sub_rows,
                      total_rows, num_blocks, steps_per_chunk, needs_tail_mask):
    chunk = pl.program_id(0)
    step = pl.program_id(1)

    @pl.when(step == 0)
    def _():
        out_ref[...] = jnp.zeros_like(out_ref)

    pw_m1 = pwm1_ref[...].astype(jnp.float32)          # (1, C), stays resident
    n_sub = block_rows // sub_rows
    blk = chunk * steps_per_chunk + step
    C = out_ref.shape[-1]

    def one_slice(x_raw, t_raw, row0, masked):
        x = x_raw.astype(jnp.float32)
        t = t_raw.astype(jnp.float32)
        nx = -x                     # reused: -|x| = min(x, nx); relu(-x) = max(nx, 0)
        log_weight = 1.0 + pw_m1 * t
        loss = (1.0 - t) * x + log_weight * (
            jnp.log1p(jnp.exp(jnp.minimum(x, nx))) + jnp.maximum(nx, 0.0))
        if masked:
            rows = row0 + jax.lax.broadcasted_iota(jnp.int32, loss.shape, 0)
            loss = jnp.where(rows < total_rows, loss, 0.0)
        # (sub_rows, C) -> (8, C) lane-dense fold; pure sublane-aligned VPU adds.
        partial = jnp.sum(loss.reshape(sub_rows // 8, 8, C), axis=0)
        out_ref[...] += partial[None]

    def accumulate(masked):
        block_row0 = blk * block_rows
        if n_sub == 1:
            one_slice(x_ref[...], t_ref[...], block_row0, masked)
        else:
            def loop_body(s, carry):
                start = pl.multiple_of(s * sub_rows, 8)
                one_slice(x_ref[pl.ds(start, sub_rows), :],
                          t_ref[pl.ds(start, sub_rows), :],
                          block_row0 + s * sub_rows, masked)
                return carry
            jax.lax.fori_loop(0, n_sub, loop_body, 0, unroll=(n_sub <= 8))

    if needs_tail_mask:
        is_last = blk == (num_blocks - 1)

        @pl.when(jnp.logical_not(is_last))
        def _():
            accumulate(False)           # hot path: no iota / compare / select

        @pl.when(is_last)
        def _():
            accumulate(True)            # rare path: mask rows past the logical end
    else:
        accumulate(False)


def bce_with_logits_mixup(inputs, target, pos_weight, *, block_rows=None,
                          num_chunks=None):
    """Mean-reduced BCE-with-logits with pos_weight, computed in a Pallas kernel.

    inputs, target: (B, C) float arrays (bf16 logits supported; kernel casts to
    f32 after DMA).  pos_weight: (C,).  Returns a float32 scalar.
    """
    orig_B, orig_C = inputs.shape
    assert target.shape == (orig_B, orig_C)
    assert pos_weight.shape == (orig_C,)

    pwm1 = (pos_weight.astype(jnp.float32) - 1.0).reshape(1, orig_C)
    x, t = inputs, target
    B, C = orig_B, orig_C

    # Lane density: fold consecutive rows so the last dim is a multiple of 128.
    fold = _lane_fold_factor(B, C)
    if fold > 1:
        x = x.reshape(B // fold, C * fold)
        t = t.reshape(B // fold, C * fold)
        pwm1 = jnp.tile(pwm1, (1, fold))
        B, C = B // fold, C * fold

    vmem_limit, target_block_bytes, n_cores = _tpu_generation()

    # --- tile sizing: big, VMEM-budgeted DMA blocks (pure mem-bound kernel) ---
    itemsize = max(jnp.dtype(x.dtype).itemsize, jnp.dtype(t.dtype).itemsize)
    if block_rows is None:
        block_rows = max(8, (target_block_bytes // (C * itemsize)) // 8 * 8)
        if block_rows >= 512:
            block_rows = (block_rows // 512) * 512
        block_rows = min(block_rows, _round_up(B, 8))
    assert block_rows % 8 == 0 and block_rows > 0
    # Sub-slice inside the kernel so f32 temporaries stay bounded.
    sub_rows = 512 if block_rows % 512 == 0 else block_rows

    num_blocks = -(-B // block_rows)
    needs_tail_mask = (B % block_rows) != 0

    # Chunk axis: 1 on single-TC chips; 2 on v7x (CORE_PARALLEL).  Always make
    # num_chunks divide num_blocks so no clamped / duplicate blocks are fetched.
    if num_chunks is None:
        num_chunks = n_cores
    num_chunks = max(1, min(int(num_chunks), num_blocks))
    while num_blocks % num_chunks != 0:
        num_chunks -= 1
    steps_per_chunk = num_blocks // num_chunks

    def data_map(chunk, step):
        return (chunk * steps_per_chunk + step, 0)

    kernel = functools.partial(
        _bce_mixup_kernel, block_rows=block_rows, sub_rows=sub_rows,
        total_rows=B, num_blocks=num_blocks, steps_per_chunk=steps_per_chunk,
        needs_tail_mask=needs_tail_mask)

    chunk_sem = pltpu.CORE_PARALLEL if num_chunks > 1 else pltpu.ARBITRARY

    partials = pl.pallas_call(
        kernel,
        out_shape=jax.ShapeDtypeStruct((num_chunks, 8, C), jnp.float32),
        grid_spec=pltpu.PrefetchScalarGridSpec(
            num_scalar_prefetch=0,
            grid=(num_chunks, steps_per_chunk),
            in_specs=[
                pl.BlockSpec((block_rows, C), data_map),
                pl.BlockSpec((block_rows, C), data_map),
                pl.BlockSpec((1, C), lambda chunk, step: (0, 0)),
            ],
            out_specs=pl.BlockSpec((1, 8, C), lambda chunk, step: (chunk, 0, 0)),
        ),
        compiler_params=pltpu.CompilerParams(
            dimension_semantics=(chunk_sem, pltpu.ARBITRARY),
            vmem_limit_bytes=vmem_limit,
        ),
    )(x, t, pwm1)

    # Tiny final reduction + mean in the wrapper (kernel output is lane-dense).
    return jnp.sum(partials) / (orig_B * orig_C)


def _reference(inputs, target, pos_weight):
    x = inputs.astype(jnp.float32)
    t = target.astype(jnp.float32)
    pw = pos_weight.astype(jnp.float32)[None, :]
    log_weight = 1.0 + (pw - 1.0) * t
    loss = (1.0 - t) * x + log_weight * (jnp.log1p(jnp.exp(-jnp.abs(x)))
                                         + jnp.maximum(-x, 0.0))
    return jnp.mean(loss)


if __name__ == "__main__":
    key = jax.random.PRNGKey(0)
    k_x, k_t, k_x2, k_t2 = jax.random.split(key, 4)

    # Logits and mixup-style soft targets of shape (B, C).
    B, C = 20, 128          # B deliberately NOT a multiple of the block size
    inputs = jax.random.normal(k_x, (B, C), dtype=jnp.float32) * 2.0
    target = jax.random.uniform(k_t, (B, C), dtype=jnp.float32)
    pos_weight = 0.5 + jnp.arange(C, dtype=jnp.float32) / C

    ref = _reference(inputs, target, pos_weight)

    # Small explicit blocks: exercises multi-block grid + tail-row masking.
    loss_small = jax.block_until_ready(
        bce_with_logits_mixup(inputs, target, pos_weight, block_rows=8))
    assert jnp.allclose(loss_small, ref, rtol=1e-5, atol=1e-5), (loss_small, ref)

    # Default auto-sized (generation-aware) blocks.
    loss_auto = jax.block_until_ready(
        bce_with_logits_mixup(inputs, target, pos_weight))
    assert jnp.allclose(loss_auto, ref, rtol=1e-5, atol=1e-5), (loss_auto, ref)

    # bf16 logits only (targets / pos_weight stay f32 for PyTorch parity).
    loss_bf16 = jax.block_until_ready(
        bce_with_logits_mixup(inputs.astype(jnp.bfloat16), target, pos_weight))
    assert jnp.allclose(loss_bf16, ref, rtol=1e-2, atol=1e-2), (loss_bf16, ref)

    # Lane-folding path: C < 128 folds row pairs into lane-dense tiles.
    B2, C2 = 16, 64
    x2 = jax.random.normal(k_x2, (B2, C2), dtype=jnp.float32)
    t2 = jax.random.uniform(k_t2, (B2, C2), dtype=jnp.float32)
    pw2 = jnp.linspace(0.5, 2.0, C2, dtype=jnp.float32)
    ref2 = _reference(x2, t2, pw2)
    loss2 = jax.block_until_ready(bce_with_logits_mixup(x2, t2, pw2))
    assert jnp.allclose(loss2, ref2, rtol=1e-5, atol=1e-5), (loss2, ref2)

    print("KERNEL_OK")
</pallas_src>

<mosaic_0001>
module attributes {stable_mosaic.version = 11 : i64} {
  func.func @_bce_mixup_kernel(%arg0: i32, %arg1: i32, %arg2: memref<8x128xf32, #tpu.memory_space<vmem>>, %arg3: memref<8x128xf32, #tpu.memory_space<vmem>>, %arg4: memref<1x128xf32, #tpu.memory_space<vmem>>, %arg5: memref<1x8x128xf32, #tpu.memory_space<vmem>>) attributes {dimension_semantics = [#tpu.dimension_semantics<arbitrary>, #tpu.dimension_semantics<arbitrary>], iteration_bounds = array<i64: 1, 3>, scalar_prefetch = 0 : i64, scratch_operands = 0 : i64, tpu.core_type = #tpu.core_type<tc>, window_params = [{transform_indices = @transform_0, window_bounds = array<i64: 8, 128>}, {transform_indices = @transform_1, window_bounds = array<i64: 8, 128>}, {pipeline_mode = #tpu.pipeline_mode<synchronous>, transform_indices = @transform_2, window_bounds = array<i64: 1, 128>}, {transform_indices = @transform_3, window_bounds = array<i64: 1, 8, 128>}]} {
    %c0_i32 = arith.constant 0 : i32
    %0 = arith.cmpi eq, %arg1, %c0_i32 : i32
    %1 = arith.extui %0 : i1 to i32
    %c0_i32_0 = arith.constant 0 : i32
    %2 = arith.cmpi ne, %1, %c0_i32_0 : i32
    scf.if %2 {
      %cst = arith.constant 0.000000e+00 : f32
      %12 = vector.broadcast %cst : f32 to vector<1x8x128xf32>
      %c0_4 = arith.constant 0 : index
      %c0_5 = arith.constant 0 : index
      %c0_6 = arith.constant 0 : index
      %13 = vector.load %arg5[%c0_4, %c0_5, %c0_6] : memref<1x8x128xf32, #tpu.memory_space<vmem>>, vector<1x8x128xf32>
      tpu.vector_store %arg5[%c0_4, %c0_5, %c0_6], %12 {strides = array<i32>} : memref<1x8x128xf32, #tpu.memory_space<vmem>>, vector<1x8x128xf32>,
    } else {
    }
    %c0 = arith.constant 0 : index
    %c0_1 = arith.constant 0 : index
    %3 = vector.load %arg4[%c0, %c0_1] : memref<1x128xf32, #tpu.memory_space<vmem>>, vector<1x128xf32>
    %c3_i32 = arith.constant 3 : i32
    %4 = arith.muli %arg0, %c3_i32 : i32
    %5 = arith.addi %4, %arg1 : i32
    %c2_i32 = arith.constant 2 : i32
    %6 = arith.cmpi eq, %5, %c2_i32 : i32
    %true = arith.constant true
    %7 = arith.xori %6, %true : i1
    %8 = arith.extui %7 : i1 to i32
    %c0_i32_2 = arith.constant 0 : i32
    %9 = arith.cmpi ne, %8, %c0_i32_2 : i32
    scf.if %9 {
      %c0_4 = arith.constant 0 : index
      %c0_5 = arith.constant 0 : index
      %12 = vector.load %arg2[%c0_4, %c0_5] : memref<8x128xf32, #tpu.memory_space<vmem>>, vector<8x128xf32>
      %c0_6 = arith.constant 0 : index
      %c0_7 = arith.constant 0 : index
      %13 = vector.load %arg3[%c0_6, %c0_7] : memref<8x128xf32, #tpu.memory_space<vmem>>, vector<8x128xf32>
      %cst = arith.constant 0.000000e+00 : f32
      %14 = vector.broadcast %cst : f32 to vector<8x128xf32>
      %15 = arith.subf %14, %12 : vector<8x128xf32>
      %16 = vector.broadcast %3 : vector<1x128xf32> to vector<8x128xf32>
      %17 = arith.mulf %16, %13 : vector<8x128xf32>
      %cst_8 = arith.constant 1.000000e+00 : f32
      %18 = vector.broadcast %cst_8 : f32 to vector<8x128xf32>
      %19 = arith.addf %18, %17 : vector<8x128xf32>
      %cst_9 = arith.constant 1.000000e+00 : f32
      %20 = vector.broadcast %cst_9 : f32 to vector<8x128xf32>
      %21 = arith.subf %20, %13 : vector<8x128xf32>
      %22 = arith.mulf %21, %12 : vector<8x128xf32>
      %23 = arith.minimumf %12, %15 : vector<8x128xf32>
      %24 = math.exp %23 : vector<8x128xf32>
      %25 = math.log1p %24 : vector<8x128xf32>
      %cst_10 = arith.constant 0.000000e+00 : f32
      %26 = vector.broadcast %cst_10 : f32 to vector<8x128xf32>
      %27 = arith.maximumf %15, %26 : vector<8x128xf32>
      %28 = arith.addf %25, %27 : vector<8x128xf32>
      %29 = arith.mulf %19, %28 : vector<8x128xf32>
      %30 = arith.addf %22, %29 : vector<8x128xf32>
      %31 = vector.shape_cast %30 : vector<8x128xf32> to vector<1x8x128xf32>
      %cst_11 = arith.constant dense<0.000000e+00> : vector<8x128xf32>
      %32 = vector.multi_reduction <add>, %31, %cst_11 [0] : vector<1x8x128xf32> to vector<8x128xf32>
      %c0_12 = arith.constant 0 : index
      %c0_13 = arith.constant 0 : index
      %c0_14 = arith.constant 0 : index
      %33 = vector.load %arg5[%c0_12, %c0_13, %c0_14] : memref<1x8x128xf32, #tpu.memory_space<vmem>>, vector<1x8x128xf32>
      %34 = vector.shape_cast %32 : vector<8x128xf32> to vector<1x8x128xf32>
      %35 = arith.addf %33, %34 : vector<1x8x128xf32>
      %c0_15 = arith.constant 0 : index
      %c0_16 = arith.constant 0 : index
      %c0_17 = arith.constant 0 : index
      %36 = vector.load %arg5[%c0_15, %c0_16, %c0_17] : memref<1x8x128xf32, #tpu.memory_space<vmem>>, vector<1x8x128xf32>
      tpu.vector_store %arg5[%c0_15, %c0_16, %c0_17], %35 {strides = array<i32>} : memref<1x8x128xf32, #tpu.memory_space<vmem>>, vector<1x8x128xf32>,
    } else {
    }
    %10 = arith.extui %6 : i1 to i32
    %c0_i32_3 = arith.constant 0 : i32
    %11 = arith.cmpi ne, %10, %c0_i32_3 : i32
    scf.if %11 {
      %c8_i32 = arith.constant 8 : i32
      %12 = arith.muli %5, %c8_i32 : i32
      %c0_4 = arith.constant 0 : index
      %c0_5 = arith.constant 0 : index
      %13 = vector.load %arg2[%c0_4, %c0_5] : memref<8x128xf32, #tpu.memory_space<vmem>>, vector<8x128xf32>
      %c0_6 = arith.constant 0 : index
      %c0_7 = arith.constant 0 : index
      %14 = vector.load %arg3[%c0_6, %c0_7] : memref<8x128xf32, #tpu.memory_space<vmem>>, vector<8x128xf32>
      %cst = arith.constant 0.000000e+00 : f32
      %15 = vector.broadcast %cst : f32 to vector<8x128xf32>
      %16 = arith.subf %15, %13 : vector<8x128xf32>
      %17 = vector.broadcast %3 : vector<1x128xf32> to vector<8x128xf32>
      %18 = arith.mulf %17, %14 : vector<8x128xf32>
      %cst_8 = arith.constant 1.000000e+00 : f32
      %19 = vector.broadcast %cst_8 : f32 to vector<8x128xf32>
      %20 = arith.addf %19, %18 : vector<8x128xf32>
      %cst_9 = arith.constant 1.000000e+00 : f32
      %21 = vector.broadcast %cst_9 : f32 to vector<8x128xf32>
      %22 = arith.subf %21, %14 : vector<8x128xf32>
      %23 = arith.mulf %22, %13 : vector<8x128xf32>
      %24 = arith.minimumf %13, %16 : vector<8x128xf32>
      %25 = math.exp %24 : vector<8x128xf32>
      %26 = math.log1p %25 : vector<8x128xf32>
      %cst_10 = arith.constant 0.000000e+00 : f32
      %27 = vector.broadcast %cst_10 : f32 to vector<8x128xf32>
      %28 = arith.maximumf %16, %27 : vector<8x128xf32>
      %29 = arith.addf %26, %28 : vector<8x128xf32>
      %30 = arith.mulf %20, %29 : vector<8x128xf32>
      %31 = arith.addf %23, %30 : vector<8x128xf32>
      %32 = tpu.iota {dimensions = array<i32: 0>} : vector<8x128xi32>
      %33 = vector.broadcast %12 : i32 to vector<8x128xi32>
      %34 = arith.addi %33, %32 : vector<8x128xi32>
      %c20_i32 = arith.constant 20 : i32
      %35 = vector.broadcast %c20_i32 : i32 to vector<8x128xi32>
      %36 = arith.cmpi slt, %34, %35 : vector<8x128xi32>
      %cst_11 = arith.constant 0.000000e+00 : f32
      %37 = vector.broadcast %cst_11 : f32 to vector<8x128xf32>
      %38 = arith.select %36, %31, %37 : vector<8x128xi1>, vector<8x128xf32>
      %39 = vector.shape_cast %38 : vector<8x128xf32> to vector<1x8x128xf32>
      %cst_12 = arith.constant dense<0.000000e+00> : vector<8x128xf32>
      %40 = vector.multi_reduction <add>, %39, %cst_12 [0] : vector<1x8x128xf32> to vector<8x128xf32>
      %c0_13 = arith.constant 0 : index
      %c0_14 = arith.constant 0 : index
      %c0_15 = arith.constant 0 : index
      %41 = vector.load %arg5[%c0_13, %c0_14, %c0_15] : memref<1x8x128xf32, #tpu.memory_space<vmem>>, vector<1x8x128xf32>
      %42 = vector.shape_cast %40 : vector<8x128xf32> to vector<1x8x128xf32>
      %43 = arith.addf %41, %42 : vector<1x8x128xf32>
      %c0_16 = arith.constant 0 : index
      %c0_17 = arith.constant 0 : index
      %c0_18 = arith.constant 0 : index
      %44 = vector.load %arg5[%c0_16, %c0_17, %c0_18] : memref<1x8x128xf32, #tpu.memory_space<vmem>>, vector<1x8x128xf32>
      tpu.vector_store %arg5[%c0_16, %c0_17, %c0_18], %43 {strides = array<i32>} : memref<1x8x128xf32, #tpu.memory_space<vmem>>, vector<1x8x128xf32>,
    } else {
    }
    return
  }
  func.func @transform_0(%arg0: i32, %arg1: i32) -> (i32, i32) {
    %c3_i32 = arith.constant 3 : i32
    %0 = arith.muli %arg0, %c3_i32 : i32
    %1 = arith.addi %0, %arg1 : i32
    %c0_i32 = arith.constant 0 : i32
    %c0_i32_0 = arith.constant 0 : i32
    return %1, %c0_i32 : i32, i32
  }
  func.func @transform_1(%arg0: i32, %arg1: i32) -> (i32, i32) {
    %c3_i32 = arith.constant 3 : i32
    %0 = arith.muli %arg0, %c3_i32 : i32
    %1 = arith.addi %0, %arg1 : i32
    %c0_i32 = arith.constant 0 : i32
    %c0_i32_0 = arith.constant 0 : i32
    return %1, %c0_i32 : i32, i32
  }
  func.func @transform_2(%arg0: i32, %arg1: i32) -> (i32, i32) {
    %c0_i32 = arith.constant 0 : i32
    %c0_i32_0 = arith.constant 0 : i32
    %c0_i32_1 = arith.constant 0 : i32
    return %c0_i32, %c0_i32_0 : i32, i32
  }
  func.func @transform_3(%arg0: i32, %arg1: i32) -> (i32, i32, i32) {
    %c0_i32 = arith.constant 0 : i32
    %c0_i32_0 = arith.constant 0 : i32
    %c0_i32_1 = arith.constant 0 : i32
    return %arg0, %c0_i32, %c0_i32_0 : i32, i32, i32
  }
}

</mosaic_0001>

<bundles_post_ra>
// kernel: tpu_custom_call.1
= control target key start
LH: loop header
LB: loop body
LE: loop exit
PB: predicated region body
PF: predicated region fallthrough
CT: control target
= control target key end

     0   :  { %8 = vsyncpa [#allocation3], 0  ;;  %s991_s0 = inlined_call_operand.hbm [shape: f32[20,128], index: 0, kind: input, shape index: {}]   ;;  %s992_s1 = inlined_call_operand.hbm [shape: f32[20,128], index: 1, kind: input, shape index: {}]   ;;  %s993_s2 = inlined_call_operand.hbm [shape: f32[1,128], index: 2, kind: input, shape index: {}]   ;;  %s994_s3 = inlined_call_operand.hbm [shape: f32[1,8,128], index: 3, kind: output, shape index: {}]  }
   0x1   :  { %10 = vsyncpa [#allocation3 + $0x1], 0 }
   0x2   :  { %11 = vsyncpa [#allocation6], 0 }
   0x3   :  { %13 = vsyncpa [#allocation6 + $0x1], 0 }
   0x4   :  { %14 = vsyncpa [#allocation4], 0  ;;  %s761_s12 = smov 0   ;;  %s763_s13 = smov 0  }
   0x5   :  { %s765_s14 = smov 0   ;;  %s767_s15 = smov 0  }
   0x6   :  { %s769_s16 = smov 0   ;;  %s771_s17 = smov 0  }
   0x7 LB: > { %s790_s18 = sadd.s32 4294967295, %s734_s17   ;;  %p56_p0 = scmp.ne.s32.totalorder %s718_s13, %s714_s12  ;;  %s734_s17 = sphi %s771_s17, %s20_s17   ;;  %s730_s16 = sphi %s769_s16, %s1012_s16   ;;  %s726_s15 = sphi %s767_s15, %s1011_s15   ;;  %s722_s14 = sphi %s765_s14, %s1010_s14   ;;  %s718_s13 = sphi %s763_s13, %s1009_s13   ;;  %s714_s12 = sphi %s761_s12, %s1008_s12  }
   0x8   : > { %p995_p1 = scmp.eq.s32.totalorder %s790_s18, 0  ;;  %p452_p2 = scmp.ge.s32.totalorder %s734_s17, 1 }
   0x9   : > { %p144_p3 = scmp.lt.s32.totalorder %s734_s17, 4  ;;  %s736_s21 = smov [#allocation7]  }
   0xa   : > { %p798_p4 = por %p995_p1, %p56_p0  ;;  %s157_s22 = sshll.u32 %s736_s21, 4  ;;  %s158_s22 = int_to_ptr.vmem [resolvable:$true] %s157_s22 }
   0xb   : > { %p802_p5 = pnand %p452_p2, %p144_p3  ;;  %s29_s24 = sadd.s32 1, %s730_s16 }
   0xc   : > { %s998_s19 = scalar_select %p798_p4, 1, 0 }
   0xd   : > { %s999_s20 = scalar_select %p802_p5, 1, 0 }
   0xe   : > { %p483_p6 = pneg %p802_p5  ;;  %s43_s25 = sadd.s32 1, %s722_s14 }
   0xf   : > { %p816_p8 = scmp.ge.s32.totalorder %s29_s24, 3  ;;  %s558_s29 = scalar_lea.hbm %s993_s2, 16 }
  0x10   : > { %p810_p7 = pnand %p483_p6, %p995_p1  ;;  %p559_p9 = scmp.ne.s32.totalorder %s993_s2, %s558_s29 }
  0x11   : > { %s1001_s26 = scalar_select %p816_p8, 1, 0 }
  0x12   : > { %p560_p10 = pneg %p810_p7  ;;  %p565_p13 = scmp.lt.u32.totalorder %s558_s29, %s993_s2 }
  0x14   : > { %p561_p11 = pnand %p560_p10, %p559_p9 }
  0x16   : > { %p562_p12 = pneg %p561_p11 }
  0x18   : > { %p567_p0 = pnand %p565_p13, %p562_p12 }
  0x1a   : > { %570 = shalt.err (!%p567_p0)
}
  0x1b   : > { %s571_s7 = scalar_lea.vmem %s158_s22, 16  ;;  %s578_s8 = scalar_lea.vmem %s158_s22, 32 }
  0x1c   : > { %p572_p2 = scmp.ne.s32.totalorder %s158_s22, %s571_s7  ;;  %p579_p1 = scmp.lt.s32.totalorder %s158_s22, %s158_s22 }
  0x1d   : > { %p580_p4 = scmp.lt.s32.totalorder %s578_s8, %s571_s7 }
  0x1e   : > { %p574_p3 = pnand %p572_p2, %p560_p10 }
  0x1f   : > { %p581_p5 = por %p580_p4, %p579_p1 }
  0x20   : > { %p575_p6 = pneg %p574_p3 }
  0x22   : > { %p582_p8 = pnand %p581_p5, %p575_p6 }
  0x24   : > { %585 = shalt.err (!%p582_p8)
}
  0x25   : > { %486 = dma.hbm_to_vmem [thread:$0]  (!%p810_p7), %s993_s2, 16, %s158_s22, [#allocation6]  }
  0x26   : > { %p1002_p9 = scmp.ne.s32.totalorder %s1001_s26, 0  ;;  %p50_p1 = scmp.ne.s32.totalorder %s722_s14, %s718_s13 }
  0x27   : > { %p51_p4 = scmp.eq.s32.totalorder %s734_s17, 0  ;;  %p495_p5 = scmp.lt.s32.totalorder %s734_s17, 3 }
  0x28   : > { %s1014_s24 = smov (%p1002_p9, %s29_s24), 0  ;;  %s168_s12 = sand.u32 1, %s722_s14  }
  0x29   : > { %s40_s11 = ssub.s32 %s730_s16, %s1014_s24  ;;  %p52_p10 = por %p51_p4, %p50_p1 }
  0x2a   : > { %p41_p8 = scmp.eq.s32.totalorder %s40_s11, 0  ;;  %s456_s21 = sshll.u32 %s730_s16, 7 }
  0x2b   : > { %s853_s27 = sshll.u32 %s168_s12, 3  ;;  %s858_s22 = scalar_lea.hbm %s991_s0, %s456_s21 }
  0x2c   : > { %s851_s23 = scalar_select %p41_p8, %s722_s14, %s43_s25  }
  0x2d   : > { %s172_s26 = scalar_lea.vmem [#allocation2], %s853_s27  ;;  %p861_p7 = pnand %p495_p5, %p52_p10 }
  0x2e   : > { %s181_s30 = sshll.u32 %s172_s26, 4  ;;  %s870_s6 = scalar_lea.hbm %s992_s1, %s456_s21  ;;  %s865_s30 = int_to_ptr.vmem [resolvable:$true] %s181_s30 }
  0x2f   : > { %s169_s7 = scalar_lea.sflag [#allocation3], %s168_s12  ;;  %s586_s8 = scalar_lea.hbm %s858_s22, 128 }
  0x30   : > { %p587_p11 = scmp.ne.s32.totalorder %s858_s22, %s586_s8  ;;  %p588_p12 = pneg %p861_p7 }
  0x31   : > { %s591_s11 = scalar_lea.hbm %s991_s0, 384  ;;  %p592_p2 = scmp.lt.u32.totalorder %s858_s22, %s991_s0 }
  0x32   : > { %p589_p13 = pnand %p588_p12, %p587_p11  ;;  %p593_p3 = scmp.lt.u32.totalorder %s591_s11, %s586_s8 }
  0x33   : > { %p595_p9 = scmp.lt.u32.totalorder %s586_s8, %s858_s22 }
  0x34   : > { %p590_p0 = pneg %p589_p13  ;;  %p594_p6 = por %p593_p3, %p592_p2 }
  0x36   : > { %p596_p1 = por %p595_p9, %p594_p6 }
  0x38   : > { %p597_p4 = pnand %p596_p1, %p590_p0 }
  0x3a   : > { %600 = shalt.err (!%p597_p4)
}
  0x3b   : > { %s601_s12 = scalar_lea.vmem %s865_s30, 128  ;;  %s737_s21 = smov [#allocation2]  }
  0x3c   : > { %p602_p5 = scmp.ne.s32.totalorder %s865_s30, %s601_s12  ;;  %s606_s26 = sshll.u32 %s737_s21, 4  ;;  %s607_s26 = int_to_ptr.vmem [resolvable:$false] %s606_s26 }
  0x3d   : > { %s608_s25 = scalar_lea.vmem %s607_s26, 256  ;;  %p609_p11 = scmp.lt.s32.totalorder %s865_s30, %s607_s26 }
  0x3e   : > { %p604_p8 = pnand %p602_p5, %p588_p12  ;;  %p610_p13 = scmp.lt.s32.totalorder %s608_s25, %s601_s12 }
  0x40   : > { %p605_p10 = pneg %p604_p8  ;;  %p611_p2 = por %p610_p13, %p609_p11 }
  0x42   : > { %p612_p3 = pnand %p611_p2, %p605_p10 }
  0x44   : > { %615 = shalt.err (!%p612_p3)
}
  0x45   : > { %490 = dma.hbm_to_vmem [thread:$0]  (!%p861_p7), %s858_s22, 128, %s865_s30, %s169_s7  }
  0x46   : > { %s188_s5 = sand.u32 1, %s734_s17   ;;  %s192_s8 = scalar_lea.vmem [#allocation5], %s853_s27 }
  0x47   : > { %s201_s9 = sshll.u32 %s192_s8, 4  ;;  %s189_s10 = scalar_lea.sflag [#allocation6], %s188_s5  ;;  %s202_s9 = int_to_ptr.vmem [resolvable:$true] %s201_s9 }
  0x48   : > { %s616_s11 = scalar_lea.hbm %s870_s6, 128  ;;  %s621_s12 = scalar_lea.hbm %s992_s1, 384 }
  0x49   : > { %p617_p0 = scmp.ne.s32.totalorder %s870_s6, %s616_s11  ;;  %p622_p1 = scmp.lt.u32.totalorder %s870_s6, %s992_s1 }
  0x4a   : > { %p623_p4 = scmp.lt.u32.totalorder %s621_s12, %s616_s11  ;;  %p625_p8 = scmp.lt.u32.totalorder %s616_s11, %s870_s6 }
  0x4b   : > { %p619_p6 = pnand %p617_p0, %p588_p12 }
  0x4c   : > { %p624_p5 = por %p623_p4, %p622_p1 }
  0x4d   : > { %p620_p9 = pneg %p619_p6 }
  0x4e   : > { %p626_p10 = por %p625_p8, %p624_p5 }
  0x50   : > { %p627_p11 = pnand %p626_p10, %p620_p9 }
  0x52   : > { %630 = shalt.err (!%p627_p11)
}
  0x53   : > { %s631_s27 = scalar_lea.vmem %s202_s9, 128  ;;  %s738_s22 = smov [#allocation5]  }
  0x54   : > { %p632_p13 = scmp.ne.s32.totalorder %s202_s9, %s631_s27  ;;  %s636_s30 = sshll.u32 %s738_s22, 4  ;;  %s637_s30 = int_to_ptr.vmem [resolvable:$false] %s636_s30 }
  0x55   : > { %s638_s7 = scalar_lea.vmem %s637_s30, 256  ;;  %p639_p0 = scmp.lt.s32.totalorder %s202_s9, %s637_s30 }
  0x56   : > { %p634_p2 = pnand %p632_p13, %p588_p12  ;;  %p640_p6 = scmp.lt.s32.totalorder %s638_s7, %s631_s27 }
  0x58   : > { %p635_p3 = pneg %p634_p2  ;;  %p641_p1 = por %p640_p6, %p639_p0 }
  0x5a   : > { %p642_p4 = pnand %p641_p1, %p635_p3 }
  0x5c   : > { %645 = shalt.err (!%p642_p4)
}
  0x5d   : > { %493 = dma.hbm_to_vmem [thread:$0]  (!%p861_p7), %s870_s6, 128, %s202_s9, %s189_s10  }
  0x5e   : > { %p1004_p9 = scmp.ne.s32.totalorder %s999_s20, 0 }
  0x5f   : > { %s212_s25 = sand.u32 (!%p1004_p9), 1, %s718_s13   ;;  %p1005_p12 = scmp.ne.s32.totalorder (!%p1004_p9), %s998_s19, 0 }
  0x60   : > { %210 = sbr.rel (%p1004_p9) target bundleno = 233 (0xe9), region = 32  ;;  %s921_s5 = sshll.u32 (!%p1004_p9), %s212_s25, 3 }
  0x61   : > { %s213_s8 = scalar_lea.sflag (!%p1004_p9), [#allocation3], %s212_s25  ;;  %s216_s11 = scalar_lea.vmem (!%p1004_p9), [#allocation2], %s921_s5 }
  0x67   : > { %697 = dma.done.wait (%p1005_p12), %s213_s8, 128  }
  0x68   : > { %699 = vsyncadd (%p1005_p12), %s213_s8, 4294967168  ;;  %s221_s4 = sand.u32 1, %s790_s18   ;;  %s225_s20 = scalar_lea.vmem [#allocation5], %s921_s5 }
  0x69   : > { %s222_s6 = scalar_lea.sflag [#allocation6], %s221_s4 }
  0x6a   : > { %701 = dma.done.wait (%p1005_p12), %s222_s6, 128  }
  0x6b   : > { %703 = vsyncadd (%p1005_p12), %s222_s6, 4294967168  ;;  %p1006_p7 = scmp.eq.s32.totalorder %s790_s18, 0 }
  0x6d   : > { %705 = dma.done.wait (%p1006_p7), [#allocation6], 16   ;;  %p1007_p5 = pmov %p1006_p7 }
  0x6e   : > { %p463_p8 = scmp.ne.s32.totalorder %s726_s15, 0 }
  0x6f   : > { %707 = vsyncadd (%p1007_p5), [#allocation6], 4294967280  ;;  %v739_v0 = vmov (!%p463_p8), 0.0  }
  0x70   : > { %259 = sbr.rel (%p463_p8) target bundleno = 119 (0x77), region = 48  ;;  %260 = vst [vmem:[#allocation8] sm:$0xff] (!%p463_p8), %v739_v0 }
  0x77 PF: > { %v261_v1 = vld [vmem:[#allocation7] sm:$0x1]  ;;  %p464_p10 = scmp.eq.s32.totalorder %s726_s15, 2 }
  0x78   : > { %v269_v2 = vld [vmem:[%s216_s11] sm:$0xff] (!%p464_p10)  ;;  %v273_v6 = vlaneseq (!%p464_p10)  ;;  %v270_v13 = vld [vmem:[%s225_s20] sm:$0xff] (!%p464_p10) }
  0x79   : > { %268 = sbr.rel (%p464_p10) target bundleno = 163 (0xa3), region = 52  ;;  %v271_v3 = vsub.f32 (!%p464_p10), 0.0, %v269_v2  ;;  %v280_v19 = vsub.f32 (!%p464_p10), 1.0, %v270_v13  ;;  %v299_v27 = vld [vmem:[#allocation8] sm:$0xff] (!%p464_p10) }
  0x7a   : > { %v274_v7 = vshrl.u32 (!%p464_p10), %v273_v6, 7 }
  0x7b   : > { %v282_v4 = vmin.f32 (!%p464_p10), %v269_v2, %v271_v3  ;;  %v294_v20 = vmax.f32 (!%p464_p10), %v271_v3, 0.0  ;;  %v281_v24 = vmul.f32 (!%p464_p10), %v280_v19, %v269_v2 }
  0x7c   : > { %v275_v10 = vsub.s32 (!%p464_p10), 0, %v274_v7 }
  0x7d   : > { %v283_v5 = vmul.f32 (!%p464_p10), 1.442695, %v282_v4 }
  0x7e   : > { %v276_v12 = vrot.slane (!%p464_p10), %v261_v1, %v275_v10 }
  0x7f   : > { %550 = vpow2.f32 (!%p464_p10), %v283_v5 }
  0x80   : > { %v278_v16 = vmul.f32 %v276_v12, %v270_v13 }
  0x82   : > { %v279_v22 = vadd.f32 1.0, %v278_v16 }
  0x89   : > { %v551_v8 = vpop.eup %550 }
  0x8a   : > { %v285_v9 = vadd.f32 1.0, %v551_v8  ;;  %v288_v11 = vmul.f32 -0.5, %v551_v8  ;;  %v291_v15 = vand.u32 2147483647, %v551_v8 }
  0x8c   : > { %552 = vlog2.f32 %v285_v9  ;;  %v289_v14 = vadd.f32 1.0, %v288_v11  ;;  %vm292_vm0 = vcmp.lt.f32.partialorder %v291_v15, 0.0004427343 }
  0x8e   : > { %v290_v17 = vmul.f32 %v551_v8, %v289_v14 }
  0x96   : > { %v553_v18 = vpop.eup %552 }
  0x97   : > { %v287_v21 = vmul.f32 0.6931472, %v553_v18 }
  0x99   : > { %v293_v23 = vsel %vm292_vm0, %v290_v17, %v287_v21 }
  0x9a   : > { %v295_v25 = vadd.f32 %v294_v20, %v293_v23 }
  0x9c   : > { %v296_v26 = vmul.f32 %v295_v25, %v279_v22 }
  0x9e   : > { %v297_v28 = vadd.f32 %v296_v26, %v281_v24 }
  0xa0   : > { %v300_v29 = vadd.f32 %v299_v27, %v297_v28 }
  0xa2   : > { %301 = vst [vmem:[#allocation8] sm:$0xff] %v300_v29 }
  0xa3 PF: > { %p465_p11 = scmp.ne.s32.totalorder %s726_s15, 2 }
  0xa4   : > { %v306_v30 = vld [vmem:[%s216_s11] sm:$0xff] (!%p465_p11)  ;;  %v310_v34 = vlaneseq (!%p465_p11)  ;;  %v307_v41 = vld [vmem:[%s225_s20] sm:$0xff] (!%p465_p11)  ;;  %s466_s19 = sshll.u32 (!%p465_p11), %s726_s15, 3 }
  0xa5   : > { %304 = sbr.rel (%p465_p11) target bundleno = 208 (0xd0), region = 56  ;;  %v308_v31 = vsub.f32 (!%p465_p11), 0.0, %v306_v30  ;;  %v317_v47 = vsub.f32 (!%p465_p11), 1.0, %v307_v41  ;;  %v337_v49 = vstv (!%p465_p11), %s466_s19 }
  0xa6   : > { %v311_v35 = vshrl.u32 (!%p465_p11), %v310_v34, 7 }
  0xa7   : > { %v319_v32 = vmin.f32 (!%p465_p11), %v306_v30, %v308_v31  ;;  %v331_v48 = vmax.f32 (!%p465_p11), %v308_v31, 0.0  ;;  %v318_v54 = vmul.f32 (!%p465_p11), %v317_v47, %v306_v30 }
  0xa8   : > { %v312_v38 = vsub.s32 (!%p465_p11), 0, %v311_v35  ;;  %v338_v53 = vadd.s32 (!%p465_p11), %v337_v49, %v311_v35 }
  0xa9   : > { %v320_v33 = vmul.f32 (!%p465_p11), 1.442695, %v319_v32  ;;  %v342_v58 = vld [vmem:[#allocation8] sm:$0xff] (!%p465_p11) }
  0xaa   : > { %v313_v40 = vrot.slane (!%p465_p11), %v261_v1, %v312_v38  ;;  %vm339_vm2 = vcmp.lt.s32.totalorder (!%p465_p11), %v338_v53, 20 }
  0xab   : > { %554 = vpow2.f32 (!%p465_p11), %v320_v33 }
  0xac   : > { %v315_v44 = vmul.f32 %v313_v40, %v307_v41 }
  0xae   : > { %v316_v51 = vadd.f32 1.0, %v315_v44 }
  0xb5   : > { %v555_v36 = vpop.eup %554 }
  0xb6   : > { %v322_v37 = vadd.f32 1.0, %v555_v36  ;;  %v325_v39 = vmul.f32 -0.5, %v555_v36  ;;  %v328_v43 = vand.u32 2147483647, %v555_v36 }
  0xb8   : > { %556 = vlog2.f32 %v322_v37  ;;  %v326_v42 = vadd.f32 1.0, %v325_v39  ;;  %vm329_vm1 = vcmp.lt.f32.partialorder %v328_v43, 0.0004427343 }
  0xba   : > { %v327_v45 = vmul.f32 %v555_v36, %v326_v42 }
  0xc2   : > { %v557_v46 = vpop.eup %556 }
  0xc3   : > { %v324_v50 = vmul.f32 0.6931472, %v557_v46 }
  0xc5   : > { %v330_v52 = vsel %vm329_vm1, %v327_v45, %v324_v50 }
  0xc6   : > { %v332_v55 = vadd.f32 %v331_v48, %v330_v52 }
  0xc8   : > { %v333_v56 = vmul.f32 %v332_v55, %v316_v51 }
  0xca   : > { %v334_v57 = vadd.f32 %v333_v56, %v318_v54 }
  0xcc   : > { %v340_v59 = vsel %vm339_vm2, %v334_v57, 0.0 }
  0xcd   : > { %v343_v60 = vadd.f32 %v342_v58, %v340_v59 }
  0xcf   : > { %344 = vst [vmem:[#allocation8] sm:$0xff] %v343_v60 }
  0xd0 PF: > { %p497_p13 = scmp.eq.s32.totalorder %s790_s18, 2  ;;  %s740_s15 = smov [#allocation8]  }
  0xd1   : > { %s354_s9 = sshll.u32 %s740_s15, 4  ;;  %s355_s9 = int_to_ptr.vmem [resolvable:$true] %s354_s9 }
  0xd2   : > { %s646_s10 = scalar_lea.vmem %s355_s9, 128  ;;  %p653_p6 = scmp.lt.s32.totalorder %s355_s9, %s355_s9 }
  0xd3   : > { %p647_p2 = scmp.ne.s32.totalorder %s355_s9, %s646_s10  ;;  %p654_p1 = scmp.lt.s32.totalorder %s646_s10, %s646_s10 }
  0xd5   : > { %p648_p3 = pnand %p647_p2, %p497_p13  ;;  %p655_p4 = por %p654_p1, %p653_p6 }
  0xd7   : > { %p649_p0 = pneg %p648_p3 }
  0xd9   : > { %p656_p9 = pnand %p655_p4, %p649_p0 }
  0xdb   : > { %659 = shalt.err (!%p656_p9)
}
  0xdc   : > { %s660_s12 = scalar_lea.hbm %s994_s3, 128 }
  0xdd   : > { %p661_p12 = scmp.ne.s32.totalorder %s994_s3, %s660_s12  ;;  %p666_p8 = scmp.lt.u32.totalorder %s660_s12, %s994_s3 }
  0xdf   : > { %p662_p7 = pnand %p661_p12, %p497_p13 }
  0xe1   : > { %p663_p5 = pneg %p662_p7 }
  0xe3   : > { %p668_p10 = pnand %p666_p8, %p663_p5 }
  0xe5   : > { %671 = shalt.err (!%p668_p10)
}
  0xe6   : > { %480 = dma.vmem_to_hbm [thread:$0]  (%p497_p13), %s355_s9, 128, %s994_s3, [#allocation4]  }
  0xe7   : > { %709 = dma.done.wait (%p497_p13), [#allocation4], 128  }
  0xe8   : > { %711 = vsyncadd (%p497_p13), [#allocation4], 4294967168 }
  0xe9 PF: > { %s20_s17 = sadd.s32 1, %s734_s17   ;;  %s1008_s12 = smov %s718_s13 }
  0xea   : > { %p17_p11 = scmp.ge.s32.totalorder %s20_s17, 5   ;;  %s1009_s13 = smov %s722_s14 }
  0xeb   : > { %s1010_s14 = smov %s851_s23  ;;  %s1011_s15 = smov %s730_s16 }
  0xec   : > { %s1012_s16 = smov %s1014_s24  ;;  %19 = sbr.rel (!%p17_p11) target bundleno = 7 (0x7), region = 99 }
  0xf3   :  { %367 = vsyncpa [#allocation3], 1 }
  0xf4   :  { %369 = vsyncpa [#allocation3 + $0x1], 1 }
  0xf5   :  { %370 = vsyncpa [#allocation6], 1 }
  0xf6   :  { %372 = vsyncpa [#allocation6 + $0x1], 1 }
  0xf7   :  { %373 = vsyncpa [#allocation4], 1 }
  0xf8   :  { %375 = vsyncpa [#allocation4 + $0x1], 1 }

</bundles_post_ra>
